<compile_context>
chip_gen: v5e
topology: v5e:2x2
jax: 0.10.0
libtpu: 0.0.40
codegen_flags: <defaults>
</compile_context>

<pallas_src>
import functools
import math

import jax
import jax.numpy as jnp
from jax import lax
from jax.experimental import pallas as pl
from jax.experimental.pallas import tpu as pltpu

_EPS = 1e-8


def _round_up(v, m):
    return ((v + m - 1) // m) * m


def _vmem_capacity_bytes():
    """Physical VMEM per TensorCore; conservative 64 MiB fallback (v7x)."""
    try:
        info = pltpu.get_tpu_info()
        cap = int(getattr(info, "vmem_capacity_bytes", 0))
        if cap > 0:
            return cap
    except Exception:
        pass
    return 64 * 1024 * 1024


def _tile_vmem_bytes(bt, C, lt, itemsize):
    """Padded VMEM footprint of one grid step (inputs double-buffered +
    estimated f32 temporaries). Accounts for sublane packing of the input
    dtype (f32->8, bf16->16, int8->32) and lane padding to 128."""
    ltp = _round_up(lt, 128)
    cp_in = _round_up(C, max(8, 32 // itemsize))
    cp_f32 = _round_up(C, 8)
    in_bufs = 4 * bt * cp_in * ltp * itemsize     # 2 inputs x 2 pipeline bufs
    f32_tmp = 5 * bt * cp_f32 * ltp * 4           # upcasts + products (est.)
    lane_tmp = 6 * bt * ltp * 4                   # dot/xx/yy/cos partials
    return in_bufs + f32_tmp + lane_tmp


def _auto_lane_tile(B, C, hw, itemsize, usable):
    """Prefer the full HW extent (contiguous DMA, no lane mask, no reduction
    axis); fall back to the largest 128-multiple tile that fits."""
    if hw <= 128 or _tile_vmem_bytes(1, C, hw, itemsize) <= usable:
        if B == 1 and hw >= 256:
            # Single batch block: split HW so two parallel grid units exist
            # (keeps both v7x TensorCores streaming HBM; near-free elsewhere).
            return max(128, _round_up(-(-hw // 2), 128))
        return hw
    per128 = _tile_vmem_bytes(1, C, 128, itemsize)
    n = max(1, usable // per128)
    return max(128, min((hw // 128) * 128, n * 128))


def _neg_cos_sim_kernel(x_ref, y_ref, o_ref, *, batch, hw, batch_tile,
                        lane_tile, n_t, mask_rows, mask_lanes):
    b = pl.program_id(0)
    p = pl.program_id(1)
    t = pl.program_id(2)

    x = x_ref[...].astype(jnp.float32)          # (bt, C, lt)
    y = y_ref[...].astype(jnp.float32)

    dot = jnp.sum(x * y, axis=1)                # (bt, lt)  XLU sublane reduce
    xx = jnp.sum(x * x, axis=1)
    yy = jnp.sum(y * y, axis=1)
    # rsqrt lowers to the EUP (its own VLIW slot) -> free under the DMA bound.
    cos = dot * lax.rsqrt(jnp.maximum(xx * yy, _EPS * _EPS))

    if mask_rows:
        # Compiled in only when B % bt != 0. Iota/compare on a (bt, 1) column,
        # then a single broadcast select over (bt, lt): ~1/(8C) of VPU work.
        row_ok = (b * batch_tile + lax.broadcasted_iota(
            jnp.int32, (batch_tile, 1), 0)) < batch
        cos = jnp.where(row_ok, cos, 0.0)

    partial = jnp.sum(cos, axis=0, keepdims=True)       # (1, lt)

    if mask_lanes:
        # Covers both the HW remainder tile and the clamped duplicate tile
        # (lane ids computed from the UNclamped logical tile index).
        lane_id = ((p * n_t + t) * lane_tile + lax.broadcasted_iota(
            jnp.int32, (1, lane_tile), 1))
        partial = jnp.where(lane_id < hw, partial, 0.0)

    # Resident per-(b, p) accumulator across the "arbitrary" reduction axis t.
    @pl.when(t == 0)
    def _():
        o_ref[...] = jnp.zeros_like(o_ref)

    o_ref[...] += partial.reshape(o_ref.shape)


def negative_cos_sim_loss(x, y, *, batch_tile=None, lane_tile=None):
    """x, y: (B, C, *spatial) arrays (PyTorch NCHW convention). Scalar loss."""
    assert x.shape == y.shape, "x and y must have the same shape"
    B, C = int(x.shape[0]), int(x.shape[1])
    hw = int(math.prod(x.shape[2:]))
    x3 = x.reshape(B, C, hw)
    y3 = y.reshape(B, C, hw)
    itemsize = int(x.dtype.itemsize)

    # Per-generation VMEM budget (96 MiB on v5e/v6e, 48 MiB on v7x).
    capacity = _vmem_capacity_bytes()
    vmem_limit = max(32 * 1024 * 1024, (capacity * 3) // 4)
    usable = max(vmem_limit // 2, vmem_limit - 8 * 1024 * 1024)

    # Lane tile.
    if lane_tile is not None:
        lt = int(lane_tile)
        lt = hw if lt >= hw else max(128, (lt // 128) * 128)  # keep it legal
    else:
        lt = _auto_lane_tile(B, C, hw, itemsize, usable)

    # Batch tile (capped at ceil(B/2) so n_b >= 2 whenever B >= 2; keeps two
    # parallel grid units available for v7x's 2 TensorCores).
    per_bt = _tile_vmem_bytes(1, C, lt, itemsize)
    if batch_tile is not None:
        bt = max(1, min(int(batch_tile), B))
    else:
        bt_cap = -(-B // 2) if B >= 2 else 1
        bt = int(max(1, min(B, bt_cap, usable // per_bt)))

    if _tile_vmem_bytes(bt, C, lt, itemsize) > usable:
        # Pathological footprint (huge C): let the compiler use more VMEM.
        vmem_limit = max(vmem_limit, capacity - 2 * 1024 * 1024)

    n_b = pl.cdiv(B, bt)
    hw_tiles = pl.cdiv(hw, lt)
    if n_b == 1 and hw_tiles >= 2:
        # No batch parallelism: split HW tiles over a 2-wide "parallel" axis.
        n_p, n_t = 2, pl.cdiv(hw_tiles, 2)
    else:
        n_p, n_t = 1, hw_tiles

    mask_rows = (B % bt) != 0
    mask_lanes = (hw % lt != 0) or (n_p * n_t != hw_tiles)

    # HW block index; clamp only when the 2-way split over-covers (odd count).
    if n_p * n_t == hw_tiles:
        def hw_block(p, t):
            return p * n_t + t
    else:
        def hw_block(p, t):
            return jnp.minimum(p * n_t + t, hw_tiles - 1)

    in_spec = pl.BlockSpec((bt, C, lt), lambda b, p, t: (b, 0, hw_block(p, t)))
    out_spec = pl.BlockSpec((1, 1, lt), lambda b, p, t: (b * n_p + p, 0, 0))

    kernel = functools.partial(
        _neg_cos_sim_kernel, batch=B, hw=hw, batch_tile=bt, lane_tile=lt,
        n_t=n_t, mask_rows=mask_rows, mask_lanes=mask_lanes)

    partials = pl.pallas_call(
        kernel,
        out_shape=jax.ShapeDtypeStruct((n_b * n_p, 1, lt), jnp.float32),
        grid_spec=pltpu.PrefetchScalarGridSpec(
            num_scalar_prefetch=0,
            grid=(n_b, n_p, n_t),
            in_specs=[in_spec, in_spec],
            out_specs=out_spec,
        ),
        compiler_params=pltpu.CompilerParams(
            dimension_semantics=("parallel", "parallel", "arbitrary"),
            vmem_limit_bytes=int(vmem_limit),
        ),
        cost_estimate=pl.CostEstimate(
            flops=int(8 * B * C * hw),
            transcendentals=int(B * hw),
            bytes_accessed=int(2 * B * C * hw * itemsize + 4 * n_b * n_p * lt),
        ),
    )(x3, y3)

    # Final mean over the TRUE element count, then negate.
    return -(jnp.sum(partials) / (B * hw))


def _reference(x, y):
    eps = 1e-8
    xf = x.astype(jnp.float32)
    yf = y.astype(jnp.float32)
    dot = jnp.sum(xf * yf, axis=1)
    denom = jnp.sqrt(jnp.maximum(
        jnp.sum(xf * xf, axis=1) * jnp.sum(yf * yf, axis=1), eps * eps))
    return -jnp.mean(dot / denom)


if __name__ == "__main__":
    key = jax.random.PRNGKey(0)
    k1, k2, k3, k4, k5, k6 = jax.random.split(key, 6)

    # Test 1: canonical small shape, full-hw contiguous tiles, n_b = 2.
    x = jax.random.normal(k1, (2, 4, 16, 16), dtype=jnp.float32)
    y = jax.random.normal(k2, (2, 4, 16, 16), dtype=jnp.float32)
    out = jax.block_until_ready(negative_cos_sim_loss(x, y))
    ref = _reference(x, y)
    assert jnp.allclose(out, ref, atol=1e-5, rtol=1e-4), (out, ref)

    # Test 2: odd sizes + forced small tiles -> batch-row and HW-lane masking
    # plus the multi-step reduction-axis accumulator.
    x2 = jax.random.normal(k3, (3, 5, 20, 20), dtype=jnp.float32)
    y2 = jax.random.normal(k4, (3, 5, 20, 20), dtype=jnp.float32)
    out2 = jax.block_until_ready(
        negative_cos_sim_loss(x2, y2, batch_tile=2, lane_tile=128))
    ref2 = _reference(x2, y2)
    assert jnp.allclose(out2, ref2, atol=1e-5, rtol=1e-4), (out2, ref2)

    # Test 3: bf16 inputs straight from HBM (halved DMA bytes, f32 compute),
    # auto tiling picks full-hw tiles with a partial batch block.
    xb = x2.astype(jnp.bfloat16)
    yb = y2.astype(jnp.bfloat16)
    out3 = jax.block_until_ready(negative_cos_sim_loss(xb, yb))
    ref3 = _reference(xb, yb)
    assert jnp.allclose(out3, ref3, atol=1e-3, rtol=1e-3), (out3, ref3)

    # Test 4: B == 1 with an odd HW tile count -> 2-way parallel HW split with
    # index-clamped + masked duplicate tile (the v7x two-TensorCore path).
    x4 = jax.random.normal(k5, (1, 4, 16, 40), dtype=jnp.float32)
    y4 = jax.random.normal(k6, (1, 4, 16, 40), dtype=jnp.float32)
    out4 = jax.block_until_ready(negative_cos_sim_loss(x4, y4, lane_tile=128))
    ref4 = _reference(x4, y4)
    assert jnp.allclose(out4, ref4, atol=1e-5, rtol=1e-4), (out4, ref4)

    print("KERNEL_OK")
</pallas_src>

<mosaic_0001>
module attributes {stable_mosaic.version = 11 : i64} {
  func.func @_neg_cos_sim_kernel(%arg0: i32, %arg1: i32, %arg2: i32, %arg3: memref<1x4x256xf32, #tpu.memory_space<vmem>>, %arg4: memref<1x4x256xf32, #tpu.memory_space<vmem>>, %arg5: memref<1x1x256xf32, #tpu.memory_space<vmem>>) attributes {dimension_semantics = [#tpu.dimension_semantics<parallel>, #tpu.dimension_semantics<parallel>, #tpu.dimension_semantics<arbitrary>], iteration_bounds = array<i64: 2, 1, 1>, scalar_prefetch = 0 : i64, scratch_operands = 0 : i64, tpu.core_type = #tpu.core_type<tc>, window_params = [{transform_indices = @transform_0, window_bounds = array<i64: 1, 4, 256>}, {transform_indices = @transform_1, window_bounds = array<i64: 1, 4, 256>}, {transform_indices = @transform_2, window_bounds = array<i64: 1, 1, 256>}]} {
    %c0 = arith.constant 0 : index
    %c0_0 = arith.constant 0 : index
    %c0_1 = arith.constant 0 : index
    %0 = vector.load %arg3[%c0, %c0_0, %c0_1] : memref<1x4x256xf32, #tpu.memory_space<vmem>>, vector<1x4x256xf32>
    %c0_2 = arith.constant 0 : index
    %c0_3 = arith.constant 0 : index
    %c0_4 = arith.constant 0 : index
    %1 = vector.load %arg4[%c0_2, %c0_3, %c0_4] : memref<1x4x256xf32, #tpu.memory_space<vmem>>, vector<1x4x256xf32>
    %2 = arith.mulf %0, %1 : vector<1x4x256xf32>
    %cst = arith.constant dense<0.000000e+00> : vector<1x256xf32>
    %3 = vector.multi_reduction <add>, %2, %cst [1] : vector<1x4x256xf32> to vector<1x256xf32>
    %4 = arith.mulf %0, %0 : vector<1x4x256xf32>
    %cst_5 = arith.constant dense<0.000000e+00> : vector<1x256xf32>
    %5 = vector.multi_reduction <add>, %4, %cst_5 [1] : vector<1x4x256xf32> to vector<1x256xf32>
    %6 = arith.mulf %1, %1 : vector<1x4x256xf32>
    %cst_6 = arith.constant dense<0.000000e+00> : vector<1x256xf32>
    %7 = vector.multi_reduction <add>, %6, %cst_6 [1] : vector<1x4x256xf32> to vector<1x256xf32>
    %8 = arith.mulf %5, %7 : vector<1x256xf32>
    %cst_7 = arith.constant 1.000000e-16 : f32
    %9 = vector.broadcast %cst_7 : f32 to vector<1x256xf32>
    %10 = arith.maximumf %8, %9 : vector<1x256xf32>
    %11 = math.rsqrt %10 : vector<1x256xf32>
    %12 = arith.mulf %3, %11 : vector<1x256xf32>
    %cst_8 = arith.constant dense<0.000000e+00> : vector<256xf32>
    %13 = vector.multi_reduction <add>, %12, %cst_8 [0] : vector<1x256xf32> to vector<256xf32>
    %14 = vector.shape_cast %13 : vector<256xf32> to vector<1x256xf32>
    %c0_i32 = arith.constant 0 : i32
    %15 = arith.cmpi eq, %arg2, %c0_i32 : i32
    %16 = arith.extui %15 : i1 to i32
    %c0_i32_9 = arith.constant 0 : i32
    %17 = arith.cmpi ne, %16, %c0_i32_9 : i32
    scf.if %17 {
      %cst_16 = arith.constant 0.000000e+00 : f32
      %22 = vector.broadcast %cst_16 : f32 to vector<1x1x256xf32>
      %c0_17 = arith.constant 0 : index
      %c0_18 = arith.constant 0 : index
      %c0_19 = arith.constant 0 : index
      %23 = vector.load %arg5[%c0_17, %c0_18, %c0_19] : memref<1x1x256xf32, #tpu.memory_space<vmem>>, vector<1x1x256xf32>
      tpu.vector_store %arg5[%c0_17, %c0_18, %c0_19], %22 {strides = array<i32>} : memref<1x1x256xf32, #tpu.memory_space<vmem>>, vector<1x1x256xf32>,
    } else {
    }
    %c0_10 = arith.constant 0 : index
    %c0_11 = arith.constant 0 : index
    %c0_12 = arith.constant 0 : index
    %18 = vector.load %arg5[%c0_10, %c0_11, %c0_12] : memref<1x1x256xf32, #tpu.memory_space<vmem>>, vector<1x1x256xf32>
    %19 = vector.shape_cast %14 : vector<1x256xf32> to vector<1x1x256xf32>
    %20 = arith.addf %18, %19 : vector<1x1x256xf32>
    %c0_13 = arith.constant 0 : index
    %c0_14 = arith.constant 0 : index
    %c0_15 = arith.constant 0 : index
    %21 = vector.load %arg5[%c0_13, %c0_14, %c0_15] : memref<1x1x256xf32, #tpu.memory_space<vmem>>, vector<1x1x256xf32>
    tpu.vector_store %arg5[%c0_13, %c0_14, %c0_15], %20 {strides = array<i32>} : memref<1x1x256xf32, #tpu.memory_space<vmem>>, vector<1x1x256xf32>,
    return
  }
  func.func @transform_0(%arg0: i32, %arg1: i32, %arg2: i32) -> (i32, i32, i32) {
    %c1_i32 = arith.constant 1 : i32
    %0 = arith.muli %arg1, %c1_i32 : i32
    %1 = arith.addi %0, %arg2 : i32
    %c0_i32 = arith.constant 0 : i32
    %c0_i32_0 = arith.constant 0 : i32
    return %arg0, %c0_i32, %1 : i32, i32, i32
  }
  func.func @transform_1(%arg0: i32, %arg1: i32, %arg2: i32) -> (i32, i32, i32) {
    %c1_i32 = arith.constant 1 : i32
    %0 = arith.muli %arg1, %c1_i32 : i32
    %1 = arith.addi %0, %arg2 : i32
    %c0_i32 = arith.constant 0 : i32
    %c0_i32_0 = arith.constant 0 : i32
    return %arg0, %c0_i32, %1 : i32, i32, i32
  }
  func.func @transform_2(%arg0: i32, %arg1: i32, %arg2: i32) -> (i32, i32, i32) {
    %c1_i32 = arith.constant 1 : i32
    %0 = arith.muli %arg0, %c1_i32 : i32
    %1 = arith.addi %0, %arg1 : i32
    %c0_i32 = arith.constant 0 : i32
    %c0_i32_0 = arith.constant 0 : i32
    %c0_i32_1 = arith.constant 0 : i32
    return %1, %c0_i32, %c0_i32_0 : i32, i32, i32
  }
}

</mosaic_0001>

<bundles_post_ra>
// kernel: tpu_custom_call.1
= control target key start
LH: loop header
LB: loop body
LE: loop exit
PB: predicated region body
PF: predicated region fallthrough
CT: control target
= control target key end

     0   :  { %7 = vsyncpa [#allocation3], 0  ;;  %s893_s0 = inlined_call_operand.hbm [shape: f32[2,4,256], index: 0, kind: input, shape index: {}]   ;;  %s894_s1 = inlined_call_operand.hbm [shape: f32[2,4,256], index: 1, kind: input, shape index: {}]   ;;  %s895_s2 = inlined_call_operand.hbm [shape: f32[2,1,256], index: 2, kind: output, shape index: {}]  }
   0x1   :  { %9 = vsyncpa [#allocation3 + $0x1], 0 }
   0x2   :  { %10 = vsyncpa [#allocation6], 0 }
   0x3   :  { %12 = vsyncpa [#allocation6 + $0x1], 0 }
   0x4   :  { %13 = vsyncpa [#allocation4], 0 }
   0x5   :  { %15 = vsyncpa [#allocation4 + $0x1], 0  ;;  %s744_s9 = smov 0   ;;  %s746_s10 = smov 0  }
   0x6   :  { %s748_s11 = smov 0   ;;  %s750_s12 = smov 0  }
   0x7   :  { %s752_s13 = smov 0   ;;  %s754_s14 = smov 0  }
   0x8 LB: > { %s488_s15 = sadd.s32 4294967295, %s726_s14   ;;  %s489_s16 = sadd.s32 4294967294, %s726_s14   ;;  %s726_s14 = sphi %s754_s14, %s21_s14   ;;  %s722_s13 = sphi %s752_s13, %s906_s13   ;;  %s718_s12 = sphi %s750_s12, %s905_s12   ;;  %s714_s11 = sphi %s748_s11, %s904_s11   ;;  %s710_s10 = sphi %s746_s10, %s903_s10   ;;  %s706_s9 = sphi %s744_s9, %s902_s9  }
   0x9   : > { %s40_s17 = sadd.s32 1, %s722_s13  ;;  %s51_s18 = sadd.s32 1, %s714_s11 }
   0xa   : > { %p42_p0 = scmp.ge.s32.totalorder %s40_s17, 2  ;;  %p58_p1 = scmp.ne.s32.totalorder %s714_s11, %s710_s10 }
   0xb   : > { %p59_p2 = scmp.eq.s32.totalorder %s726_s14, 0  ;;  %p64_p3 = scmp.ne.s32.totalorder %s710_s10, %s706_s9 }
   0xc   : > { %s908_s17 = smov (%p42_p0, %s40_s17), 0  ;;  %p65_p5 = scmp.eq.s32.totalorder %s488_s15, 0 }
   0xd   : > { %p785_p4 = por %p59_p2, %p58_p1  ;;  %s46_s20 = ssub.s32 %s722_s13, %s908_s17 }
   0xe   : > { %p120_p6 = scmp.eq.s32.totalorder %s488_s15, 1  ;;  %p49_p7 = scmp.eq.s32.totalorder %s46_s20, 0 }
   0xf   : > { %p791_p8 = por %p65_p5, %p64_p3  ;;  %p126_p10 = scmp.eq.s32.totalorder %s489_s16, 1 }
  0x10   : > { %p795_p9 = por %p120_p6, %p58_p1  ;;  %p491_p12 = scmp.ge.s32.totalorder %s726_s14, 2 }
  0x11   : > { %s800_s23 = scalar_select %p49_p7, %s714_s11, %s51_s18  }
  0x12   : > { %p802_p11 = por %p126_p10, %p64_p3  ;;  %p525_p13 = scmp.lt.s32.totalorder %s726_s14, 2 }
  0x13   : > { %s146_s25 = sand.u32 1, %s714_s11   ;;  %s506_s27 = sshll.u32 %s722_s13, 3 }
  0x14   : > { %s492_s26 = sshll.u32 %s146_s25, 3  ;;  %s158_s30 = scalar_lea.hbm %s893_s0, %s506_s27 }
  0x15   : > { %s150_s3 = scalar_lea.vmem [#allocation2], %s492_s26  ;;  %s160_s5 = sshll.u32 %s158_s30, 4  ;;  %s161_s5 = int_to_ptr.hbm [resolvable:$true] %s160_s5 }
  0x16   : > { %s162_s4 = sshll.u32 %s150_s3, 4  ;;  %p515_p0 = pnand %p525_p13, %p785_p4  ;;  %s163_s4 = int_to_ptr.vmem [resolvable:$true] %s162_s4 }
  0x17   : > { %p498_p1 = scmp.ge.s32.totalorder %s726_s14, 1  ;;  %p190_p2 = scmp.lt.s32.totalorder %s726_s14, 3 }
  0x18   : > { %s147_s6 = scalar_lea.sflag [#allocation3], %s146_s25  ;;  %s181_s15 = scalar_lea.hbm %s894_s1, %s506_s27 }
  0x19   : > { %517 = dma.hbm_to_vmem [thread:$0]  (!%p515_p0), %s161_s5, 128, %s163_s4, %s147_s6  }
  0x1a   : > { %p191_p3 = pnand %p498_p1, %p190_p2  ;;  %s173_s16 = scalar_lea.vmem [#allocation5], %s492_s26 }
  0x1b   : > { %s185_s18 = sshll.u32 %s173_s16, 4  ;;  %s183_s20 = sshll.u32 %s181_s15, 4  ;;  %s186_s18 = int_to_ptr.vmem [resolvable:$true] %s185_s18  ;;  %s184_s20 = int_to_ptr.hbm [resolvable:$true] %s183_s20 }
  0x1c   : > { %s170_s28 = scalar_lea.sflag [#allocation6], %s146_s25  ;;  %194 = sbr.rel (%p191_p3) target bundleno = 109 (0x6d), region = 28 }
  0x1d   : > { %520 = dma.hbm_to_vmem [thread:$0]  (!%p515_p0), %s184_s20, 128, %s186_s18, %s170_s28  }
  0x1e   : > { %s821_s19 = sand.u32 (!%p191_p3), 1, %s710_s10  }
  0x1f   : > { %s499_s29 = sshll.u32 (!%p191_p3), %s821_s19, 3  ;;  %s197_s30 = scalar_lea.sflag (!%p191_p3), [#allocation3], %s821_s19 }
  0x20   : > { %s200_s3 = scalar_lea.vmem (!%p191_p3), [#allocation2], %s499_s29 }
  0x21   : > { %693 = dma.done.wait (%p791_p8), %s197_s30, 128  }
  0x22   : > { %695 = vsyncadd (%p791_p8), %s197_s30, 4294967168  ;;  %s207_s26 = scalar_lea.sflag [#allocation6], %s821_s19  ;;  %s210_s25 = scalar_lea.vmem [#allocation5], %s499_s29 }
  0x23   : > { %697 = dma.done.wait (%p791_p8), %s207_s26, 128  }
  0x24   : > { %699 = vsyncadd (%p791_p8), %s207_s26, 4294967168  ;;  %v242_v0 = vld [vmem:[%s200_s3] sm:$0xff]  ;;  %v243_v1 = vld [vmem:[%s210_s25] sm:$0xff]  ;;  %vm251_vm0 = vcmask 1043456   ;;  %s501_s21 = sshll.u32 %s821_s19, 1  ;;  %v340_v17 = vlaneseq  ;;  %v728_v25 = vmov 0.0  }
  0x25   : > { %v244_v2 = vmul.f32 %v243_v1, %v242_v0  ;;  %v266_v3 = vmul.f32 %v242_v0, %v242_v0  ;;  %v287_v6 = vmul.f32 %v243_v1, %v243_v1  ;;  %s843_s27 = scalar_lea.vmem [#allocation7], %s501_s21  ;;  %s503_s4 = sshll.u32 %s718_s12, 1  ;;  %vm349_vm8 = vcmask 1040384  }
  0x26   : > { %vm839_vm1 = vcmp.lt.s32.totalorder %v340_v17, 256  ;;  %s370_s7 = scalar_lea.hbm %s895_s2, %s503_s4  ;;  %s372_s12 = sshll.u32 %s843_s27, 4  ;;  %s373_s12 = int_to_ptr.vmem [resolvable:$true] %s372_s12 }
  0x27   : > { %246 = vst [vmem:[#allocation1] ss:$2 sm:$0xff] %v244_v2  ;;  %s374_s8 = sshll.u32 %s370_s7, 4  ;;  %s359_s15 = scalar_lea.sflag [#allocation4], %s821_s19  ;;  %s375_s8 = int_to_ptr.hbm [resolvable:$true] %s374_s8 }
  0x28   : > { %344 = vst.msk [vmem:[%s843_s27] sm:$0x3] %vm839_vm1, %v728_v25  ;;  %s654_s16 = sshra.s32 %s375_s8, 4  ;;  %s660_s29 = scalar_lea.hbm %s895_s2, 4  ;;  %s655_s16 = int_to_ptr.hbm [resolvable:$true] %s654_s16 }
  0x29   : > { %s656_s18 = scalar_lea.hbm %s655_s16, 2  ;;  %p661_p7 = scmp.lt.s32.totalorder %s655_s16, %s895_s2 }
  0x2a   : > { %p657_p4 = scmp.ne.s32.totalorder %s655_s16, %s656_s18  ;;  %p662_p8 = scmp.lt.s32.totalorder %s660_s29, %s656_s18 }
  0x2c   : > { %p658_p5 = pnand %p657_p4, %p795_p9  ;;  %p663_p10 = por %p662_p8, %p661_p7 }
  0x2e   : > { %v247_v4 = vld.sshfl [vmem:[#allocation1] sm:$0xff pattern:$0x75316420]  ;;  %v248_v5 = vld.sshfl [vmem:[#allocation1 + $0x8] sm:$0xff pattern:$0x75316420]  ;;  %p659_p6 = pneg %p658_p5 }
  0x2f   : > { %268 = vst [vmem:[#allocation1] ss:$2 sm:$0xff] %v266_v3  ;;  %v259_v38 = vsel %vm251_vm0, %v248_v5, 0.0  ;;  %v252_v43 = vsel %vm251_vm0, %v247_v4, 0.0 }
  0x30   : > { %v260_v46 = vrot.slane %v259_v38, 4  ;;  %v253_v49 = vrot.slane %v252_v43, 4  ;;  %p664_p13 = pnand %p663_p10, %p659_p6 }
  0x32   : > { %v261_v50 = vadd.f32 %v260_v46, %v259_v38  ;;  %v254_v51 = vadd.f32 %v253_v49, %v252_v43 }
  0x34   : > { %v262_v52 = vrot.slane %v261_v50, 2  ;;  %v255_v55 = vrot.slane %v254_v51, 2 }
  0x36   : > { %v269_v7 = vld.sshfl [vmem:[#allocation1] sm:$0xff pattern:$0x75316420]  ;;  %v270_v8 = vld.sshfl [vmem:[#allocation1 + $0x8] sm:$0xff pattern:$0x75316420]  ;;  %v263_v58 = vadd.f32 %v262_v52, %v261_v50  ;;  %v256_v61 = vadd.f32 %v255_v55, %v254_v51 }
  0x37   : > { %v273_v9 = vsel %vm251_vm0, %v269_v7, 0.0  ;;  %v280_v10 = vsel %vm251_vm0, %v270_v8, 0.0  ;;  %289 = vst [vmem:[#allocation1] ss:$2 sm:$0xff] %v287_v6 }
  0x38   : > { %v274_v11 = vrot.slane %v273_v9, 4  ;;  %v281_v12 = vrot.slane %v280_v10, 4  ;;  %v264_v0 = vrot.slane %v263_v58, 1  ;;  %v257_v3 = vrot.slane %v256_v61, 1 }
  0x3a   : > { %v275_v13 = vadd.f32 %v274_v11, %v273_v9  ;;  %v282_v14 = vadd.f32 %v281_v12, %v280_v10  ;;  %v265_v6 = vadd.f32 %v264_v0, %v263_v58  ;;  %v258_v9 = vadd.f32 %v257_v3, %v256_v61  ;;  %v345_v12 = vld [vmem:[%s843_s27] sm:$0x3] }
  0x3c   : > { %v276_v15 = vrot.slane %v275_v13, 2  ;;  %v283_v16 = vrot.slane %v282_v14, 2 }
  0x3e   : > { %v290_v18 = vld.sshfl [vmem:[#allocation1] sm:$0xff pattern:$0x75316420]  ;;  %v291_v19 = vld.sshfl [vmem:[#allocation1 + $0x8] sm:$0xff pattern:$0x75316420]  ;;  %v277_v26 = vadd.f32 %v276_v15, %v275_v13  ;;  %v284_v27 = vadd.f32 %v283_v16, %v282_v14 }
  0x3f   : > { %v294_v20 = vsel %vm251_vm0, %v290_v18, 0.0  ;;  %v301_v21 = vsel %vm251_vm0, %v291_v19, 0.0 }
  0x40   : > { %v295_v23 = vrot.slane %v294_v20, 4  ;;  %v302_v24 = vrot.slane %v301_v21, 4  ;;  %v278_v32 = vrot.slane %v277_v26, 1  ;;  %v285_v33 = vrot.slane %v284_v27, 1 }
  0x42   : > { %v296_v28 = vadd.f32 %v295_v23, %v294_v20  ;;  %v303_v29 = vadd.f32 %v302_v24, %v301_v21  ;;  %v279_v39 = vadd.f32 %v278_v32, %v277_v26  ;;  %v286_v40 = vadd.f32 %v285_v33, %v284_v27 }
  0x44   : > { %v297_v30 = vrot.slane %v296_v28, 2  ;;  %v304_v31 = vrot.slane %v303_v29, 2 }
  0x46   : > { %v298_v34 = vadd.f32 %v297_v30, %v296_v28  ;;  %v305_v35 = vadd.f32 %v304_v31, %v303_v29 }
  0x48   : > { %v299_v36 = vrot.slane %v298_v34, 1  ;;  %v306_v37 = vrot.slane %v305_v35, 1 }
  0x4a   : > { %v300_v41 = vadd.f32 %v299_v36, %v298_v34  ;;  %v307_v42 = vadd.f32 %v306_v37, %v305_v35 }
  0x4c   : > { %v308_v44 = vmul.f32 %v300_v41, %v279_v39  ;;  %v309_v45 = vmul.f32 %v307_v42, %v286_v40 }
  0x4e   : > { %v310_v47 = vmax.f32 %v308_v44, 1e-16  ;;  %v311_v48 = vmax.f32 %v309_v45, 1e-16 }
  0x50   : > { %576 = vrsqrt.f32 %v310_v47  ;;  %vm318_vm4 = vweird.f32 %v310_v47  ;;  %vm328_vm6 = vweird.f32 %v311_v48 }
  0x51   : > { %578 = vrsqrt.f32 %v311_v48 }
  0x56   : > { %v577_v53 = vpop.eup %576 }
  0x57   : > { %v579_v54 = vpop.eup %578  ;;  %v313_v56 = vmul.f32 %v577_v53, %v310_v47  ;;  %vm319_vm2 = vweird.f32 %v577_v53 }
  0x58   : > { %v323_v57 = vmul.f32 %v579_v54, %v311_v48  ;;  %vm329_vm3 = vweird.f32 %v579_v54  ;;  %vm320_vm5 = vmor %vm318_vm4, %vm319_vm2 }
  0x59   : > { %v314_v59 = vmul.f32 %v577_v53, %v313_v56  ;;  %vm330_vm7 = vmor %vm328_vm6, %vm329_vm3 }
  0x5a   : > { %v324_v60 = vmul.f32 %v579_v54, %v323_v57 }
  0x5b   : > { %v315_v62 = vmul.f32 0.5, %v314_v59 }
  0x5c   : > { %v325_v63 = vmul.f32 0.5, %v324_v60 }
  0x5d   : > { %v316_v1 = vsub.f32 1.5, %v315_v62 }
  0x5e   : > { %v326_v2 = vsub.f32 1.5, %v325_v63 }
  0x5f   : > { %v317_v4 = vmul.f32 %v577_v53, %v316_v1 }
  0x60   : > { %v327_v5 = vmul.f32 %v579_v54, %v326_v2 }
  0x61   : > { %v321_v7 = vsel %vm320_vm5, %v577_v53, %v317_v4 }
  0x62   : > { %v331_v8 = vsel %vm330_vm7, %v579_v54, %v327_v5  ;;  %v332_v11 = vmul.f32 %v321_v7, %v258_v9 }
  0x63   : > { %v333_v10 = vmul.f32 %v331_v8, %v265_v6 }
  0x65   : > { %v348_v13 = vrot.slane %v333_v10, 7 }
  0x67   : > { %v350_v14 = vsel %vm349_vm8, %v332_v11, %v348_v13 }
  0x68   : > { %v352_v15 = vadd.f32 %v350_v14, %v345_v12 }
  0x6a   : > { %357 = vst.msk [vmem:[%s843_s27] sm:$0x3] %vm839_vm1, %v352_v15 }
  0x6b   : > { %667 = shalt.err (!%p664_p13)
}
  0x6c   : > { %512 = dma.vmem_to_hbm [thread:$0]  (%p795_p9), %s373_s12, 32, %s375_s8, %s359_s15  }
  0x6d PF: > { %s386_s19 = sand.u32 1, %s706_s9   ;;  %p522_p0 = pnand %p491_p12, %p802_p11 }
  0x6e   : > { %s387_s26 = scalar_lea.sflag [#allocation4], %s386_s19 }
  0x6f   : > { %p523_p1 = pneg %p522_p0 }
  0x71   : > { %701 = dma.done.wait (%p523_p1), %s387_s26, 32  }
  0x72   : > { %703 = vsyncadd (%p523_p1), %s387_s26, 4294967264  ;;  %s21_s14 = sadd.s32 1, %s726_s14   ;;  %s902_s9 = smov %s710_s10 }
  0x73   : > { %p18_p2 = scmp.ge.s32.totalorder %s21_s14, 4   ;;  %s903_s10 = smov %s714_s11 }
  0x74   : > { %s904_s11 = smov %s800_s23  ;;  %s905_s12 = smov %s722_s13 }
  0x75   : > { %s906_s13 = smov %s908_s17  ;;  %20 = sbr.rel (!%p18_p2) target bundleno = 8 (0x8), region = 90 }
  0x7a   :  { %393 = vsyncpa [#allocation3], 1 }
  0x7b   :  { %395 = vsyncpa [#allocation3 + $0x1], 1 }
  0x7c   :  { %396 = vsyncpa [#allocation6], 1 }
  0x7d   :  { %398 = vsyncpa [#allocation6 + $0x1], 1 }
  0x7e   :  { %399 = vsyncpa [#allocation4], 1 }
  0x7f   :  { %401 = vsyncpa [#allocation4 + $0x1], 1 }

</bundles_post_ra>
